<compile_context>
chip_gen: v6e
topology: v6e:2x2x1
jax: 0.10.0
libtpu: 0.0.40
codegen_flags: <defaults>
</compile_context>

<pallas_src>
import functools
import math

import jax
import jax.numpy as jnp
from jax import lax
from jax.experimental import pallas as pl
from jax.experimental.pallas import tpu as pltpu

OMEGA_DEFAULT = 10.0
EPSILON_DEFAULT = 2.0

_LANES = 128
_MAX_TILE_ROWS = 2048                 # 2048 x 128 f32 = 1 MiB per input per buffer
_VMEM_LIMIT_BYTES = 32 * 1024 * 1024  # fits default scoped VMEM on all generations


def _round_up(x, m):
    return ((x + m - 1) // m) * m


def _wing_kernel(pred_ref, tgt_ref, out_ref, *,
                 omega, inv_eps, C, tm, strip, rows_valid):
    """One grid step: reduce a (tm, 128) lane-dense tile to an (8, 128) partial.

    pred_ref / tgt_ref : (tm, 128) VMEM tiles in the ORIGINAL input dtype.
    out_ref            : (8, 128) f32 per-tile partial-sum block.

    The tile is streamed in (strip, 128) slices with a vreg-resident (8, 128)
    f32 accumulator, so the live set stays ~a dozen vregs (no full-tile
    d/loss intermediates that would round-trip through VMEM).
    """
    i = pl.program_id(0)
    tile_row0 = i * tm                    # global row offset of this tile
    n_strips = tm // strip
    needs_mask = (rows_valid % tm) != 0   # static: only the ragged last tile

    def body(s, acc):
        r0 = pl.multiple_of(s * strip, strip)
        p = pred_ref[pl.ds(r0, strip), :].astype(jnp.float32)
        t = tgt_ref[pl.ds(r0, strip), :].astype(jnp.float32)
        d = jnp.abs(t - p)
        # Matches torch exactly: omega*log(1 + d/eps) if d < omega else d - C.
        loss = jnp.where(d < omega, omega * jnp.log(1.0 + d * inv_eps), d - C)
        if needs_mask:
            # Rows past the logical array end hold unspecified data; zero them
            # so garbage never enters the sum (only active on the last tile).
            grow = (tile_row0 + r0
                    + lax.broadcasted_iota(jnp.int32, (strip, _LANES), 0))
            loss = jnp.where(grow < rows_valid, loss, 0.0)
        # Fold the strip into an (8, 128) partial: pure VPU adds, slices land
        # on f32 (8, 128) tile boundaries.
        part = loss[0:8]
        for h in range(1, strip // 8):
            part = part + loss[h * 8:(h + 1) * 8]
        return acc + part

    acc = lax.fori_loop(0, n_strips, body,
                        jnp.zeros((8, _LANES), jnp.float32),
                        unroll=min(8, n_strips))
    out_ref[...] = acc


def wing_loss(pred, target, omega=OMEGA_DEFAULT, epsilon=EPSILON_DEFAULT,
              small_input_fallback=None):
    """pred, target: same-shape float arrays -> scalar float32 WingLoss.

    small_input_fallback: if set and numel < threshold, use the fused pure-JAX
    path (cheaper than a kernel launch for tiny landmark tensors).
    """
    assert pred.shape == target.shape, "pred/target shapes must match"
    omega = float(omega)
    epsilon = float(epsilon)
    C = omega - omega * math.log(1.0 + omega / epsilon)
    n = int(pred.size)

    if small_input_fallback is not None and n < int(small_input_fallback):
        return _reference_wing_loss(pred, target, omega, epsilon)

    # Sublane pack of the input dtype: 8 rows/vreg for 4-byte, 16 for 2-byte.
    itemsize = jnp.dtype(pred.dtype).itemsize
    sub = 8 * max(1, 4 // itemsize)

    rows = pl.cdiv(n, _LANES)
    padded = rows * _LANES

    def _to_slab(x):
        x = jnp.ravel(x)                  # bitcast for contiguous inputs
        if padded != n:
            # Only when n % 128 != 0: pad <=127 zeros on BOTH inputs so padded
            # deltas are exactly 0 (-> 0 loss, no masking needed for them).
            # When n % 128 == 0 there is NO extra HBM pass at all.
            x = jnp.pad(x, (0, padded - n))
        return x.reshape(rows, _LANES)    # original dtype: no wrapper f32 cast

    pred2d = _to_slab(pred)
    tgt2d = _to_slab(target)

    tm = min(_round_up(rows, sub), _MAX_TILE_ROWS)   # multiple of `sub`
    grid = pl.cdiv(rows, tm)

    kernel = functools.partial(
        _wing_kernel, omega=omega, inv_eps=1.0 / epsilon, C=C,
        tm=tm, strip=sub, rows_valid=rows)

    partials = pl.pallas_call(
        kernel,
        out_shape=jax.ShapeDtypeStruct((grid * 8, _LANES), jnp.float32),
        grid_spec=pltpu.PrefetchScalarGridSpec(
            num_scalar_prefetch=0,
            grid=(grid,),
            in_specs=[
                pl.BlockSpec((tm, _LANES), lambda i: (i, 0)),
                pl.BlockSpec((tm, _LANES), lambda i: (i, 0)),
            ],
            out_specs=pl.BlockSpec((8, _LANES), lambda i: (i, 0)),
        ),
        compiler_params=pltpu.CompilerParams(
            dimension_semantics=("parallel",),
            vmem_limit_bytes=_VMEM_LIMIT_BYTES,
        ),
    )(pred2d, tgt2d)

    # Tiny final reduction + mean denominator (= len(loss1)+len(loss2)) in the
    # wrapper; masked/padded entries contribute exactly 0.
    return jnp.sum(partials) / jnp.float32(n)


def _reference_wing_loss(pred, target, omega=OMEGA_DEFAULT,
                         epsilon=EPSILON_DEFAULT):
    """Pure-JAX reference mirroring the PyTorch forward exactly."""
    d = jnp.abs(target.astype(jnp.float32) - pred.astype(jnp.float32))
    C = omega - omega * math.log(1.0 + omega / epsilon)
    loss = jnp.where(d < omega, omega * jnp.log(1.0 + d / epsilon), d - C)
    # (loss1.sum() + loss2.sum()) / (len(loss1) + len(loss2))  ==  mean
    return jnp.mean(loss)


if __name__ == "__main__":
    key = jax.random.PRNGKey(0)
    k1, k2, k3, k4 = jax.random.split(key, 4)

    # Landmark-regression-style input: [B, C, H, W].  Ranges chosen so
    # |target - pred| straddles omega=10 -> both branches are exercised.
    B, C, H, W = 2, 4, 16, 16
    pred = jax.random.uniform(k1, (B, C, H, W), jnp.float32, -2.0, 2.0)
    target = jax.random.uniform(k2, (B, C, H, W), jnp.float32, -20.0, 20.0)

    loss = jax.block_until_ready(wing_loss(pred, target))
    ref = jax.block_until_ready(_reference_wing_loss(pred, target))
    assert jnp.allclose(loss, ref, rtol=1e-5, atol=1e-5), (loss, ref)

    # Odd-sized input: exercises the <128-element lane pad (n % 128 != 0) and
    # the in-kernel ragged-row mask (rows % tm != 0).
    pred_o = jax.random.uniform(k3, (3, 7, 64), jnp.float32, -2.0, 2.0)
    target_o = jax.random.uniform(k4, (3, 7, 64), jnp.float32, -20.0, 20.0)
    loss_o = jax.block_until_ready(wing_loss(pred_o, target_o))
    ref_o = jax.block_until_ready(_reference_wing_loss(pred_o, target_o))
    assert jnp.allclose(loss_o, ref_o, rtol=1e-5, atol=1e-5), (loss_o, ref_o)

    print("KERNEL_OK")
</pallas_src>

<mosaic_0001>
module attributes {stable_mosaic.version = 11 : i64} {
  func.func @_wing_kernel(%arg0: i32, %arg1: memref<16x128xf32, #tpu.memory_space<vmem>>, %arg2: memref<16x128xf32, #tpu.memory_space<vmem>>, %arg3: memref<8x128xf32, #tpu.memory_space<vmem>>) attributes {dimension_semantics = [#tpu.dimension_semantics<parallel>], iteration_bounds = array<i64: 1>, scalar_prefetch = 0 : i64, scratch_operands = 0 : i64, tpu.core_type = #tpu.core_type<tc>, window_params = [{transform_indices = @transform_0, window_bounds = array<i64: 16, 128>}, {transform_indices = @transform_1, window_bounds = array<i64: 16, 128>}, {transform_indices = @transform_2, window_bounds = array<i64: 8, 128>}]} {
    %cst = arith.constant 0.000000e+00 : f32
    %0 = vector.broadcast %cst : f32 to vector<8x128xf32>
    %c0_i32 = arith.constant 0 : i32
    %c8_i32 = arith.constant 8 : i32
    %1 = arith.muli %c0_i32, %c8_i32 : i32
    %2 = tpu.assume_multiple %1, 8 : i32
    %3 = arith.index_cast %2 : i32 to index
    %c0 = arith.constant 0 : index
    %4 = vector.load %arg1[%3, %c0] : memref<16x128xf32, #tpu.memory_space<vmem>>, vector<8x128xf32>
    %5 = arith.index_cast %2 : i32 to index
    %c0_0 = arith.constant 0 : index
    %6 = vector.load %arg2[%5, %c0_0] : memref<16x128xf32, #tpu.memory_space<vmem>>, vector<8x128xf32>
    %7 = arith.subf %6, %4 : vector<8x128xf32>
    %8 = math.absf %7 : vector<8x128xf32>
    %cst_1 = arith.constant 1.000000e+01 : f32
    %9 = vector.broadcast %cst_1 : f32 to vector<8x128xf32>
    %10 = arith.cmpf olt, %8, %9 : vector<8x128xf32>
    %cst_2 = arith.constant 5.000000e-01 : f32
    %11 = vector.broadcast %cst_2 : f32 to vector<8x128xf32>
    %12 = arith.mulf %8, %11 : vector<8x128xf32>
    %cst_3 = arith.constant 1.000000e+00 : f32
    %13 = vector.broadcast %cst_3 : f32 to vector<8x128xf32>
    %14 = arith.addf %13, %12 : vector<8x128xf32>
    %15 = math.log %14 : vector<8x128xf32>
    %cst_4 = arith.constant 1.000000e+01 : f32
    %16 = vector.broadcast %cst_4 : f32 to vector<8x128xf32>
    %17 = arith.mulf %16, %15 : vector<8x128xf32>
    %cst_5 = arith.constant -7.9175949 : f32
    %18 = vector.broadcast %cst_5 : f32 to vector<8x128xf32>
    %19 = arith.subf %8, %18 : vector<8x128xf32>
    %20 = arith.select %10, %17, %19 : vector<8x128xi1>, vector<8x128xf32>
    %21 = arith.addf %0, %20 : vector<8x128xf32>
    %c1_i32 = arith.constant 1 : i32
    %c8_i32_6 = arith.constant 8 : i32
    %22 = arith.muli %c1_i32, %c8_i32_6 : i32
    %23 = tpu.assume_multiple %22, 8 : i32
    %24 = arith.index_cast %23 : i32 to index
    %c0_7 = arith.constant 0 : index
    %25 = vector.load %arg1[%24, %c0_7] : memref<16x128xf32, #tpu.memory_space<vmem>>, vector<8x128xf32>
    %26 = arith.index_cast %23 : i32 to index
    %c0_8 = arith.constant 0 : index
    %27 = vector.load %arg2[%26, %c0_8] : memref<16x128xf32, #tpu.memory_space<vmem>>, vector<8x128xf32>
    %28 = arith.subf %27, %25 : vector<8x128xf32>
    %29 = math.absf %28 : vector<8x128xf32>
    %cst_9 = arith.constant 1.000000e+01 : f32
    %30 = vector.broadcast %cst_9 : f32 to vector<8x128xf32>
    %31 = arith.cmpf olt, %29, %30 : vector<8x128xf32>
    %cst_10 = arith.constant 5.000000e-01 : f32
    %32 = vector.broadcast %cst_10 : f32 to vector<8x128xf32>
    %33 = arith.mulf %29, %32 : vector<8x128xf32>
    %cst_11 = arith.constant 1.000000e+00 : f32
    %34 = vector.broadcast %cst_11 : f32 to vector<8x128xf32>
    %35 = arith.addf %34, %33 : vector<8x128xf32>
    %36 = math.log %35 : vector<8x128xf32>
    %cst_12 = arith.constant 1.000000e+01 : f32
    %37 = vector.broadcast %cst_12 : f32 to vector<8x128xf32>
    %38 = arith.mulf %37, %36 : vector<8x128xf32>
    %cst_13 = arith.constant -7.9175949 : f32
    %39 = vector.broadcast %cst_13 : f32 to vector<8x128xf32>
    %40 = arith.subf %29, %39 : vector<8x128xf32>
    %41 = arith.select %31, %38, %40 : vector<8x128xi1>, vector<8x128xf32>
    %42 = arith.addf %21, %41 : vector<8x128xf32>
    %c2_i32 = arith.constant 2 : i32
    %c0_14 = arith.constant 0 : index
    %c0_15 = arith.constant 0 : index
    %43 = vector.load %arg3[%c0_14, %c0_15] : memref<8x128xf32, #tpu.memory_space<vmem>>, vector<8x128xf32>
    tpu.vector_store %arg3[%c0_14, %c0_15], %42 {strides = array<i32>} : memref<8x128xf32, #tpu.memory_space<vmem>>, vector<8x128xf32>,
    return
  }
  func.func @transform_0(%arg0: i32) -> (i32, i32) {
    %c0_i32 = arith.constant 0 : i32
    %c0_i32_0 = arith.constant 0 : i32
    return %arg0, %c0_i32 : i32, i32
  }
  func.func @transform_1(%arg0: i32) -> (i32, i32) {
    %c0_i32 = arith.constant 0 : i32
    %c0_i32_0 = arith.constant 0 : i32
    return %arg0, %c0_i32 : i32, i32
  }
  func.func @transform_2(%arg0: i32) -> (i32, i32) {
    %c0_i32 = arith.constant 0 : i32
    %c0_i32_0 = arith.constant 0 : i32
    return %arg0, %c0_i32 : i32, i32
  }
}

</mosaic_0001>

<bundles_post_ra>
// kernel: tpu_custom_call.1
= control target key start
LH: loop header
LB: loop body
LE: loop exit
PB: predicated region body
PF: predicated region fallthrough
CT: control target
= control target key end

     0   :  { %7 = vsyncpa [#allocation3], 0  ;;  %s191_s0 = inlined_call_operand.hbm [shape: f32[16,128], index: 0, kind: input, shape index: {}]   ;;  %s192_s1 = inlined_call_operand.hbm [shape: f32[16,128], index: 1, kind: input, shape index: {}]   ;;  %s193_s2 = inlined_call_operand.hbm [shape: f32[8,128], index: 2, kind: output, shape index: {}]  }
   0x1   :  { %8 = vsyncpa [#allocation6], 0 }
   0x2   :  { %9 = vsyncpa [#allocation4], 0  ;;  %s162_s9 = smov [#allocation2]  }
   0x3   :  { %s15_s10 = sshll.u32 %s162_s9, 4  ;;  %s16_s10 = int_to_ptr.vmem [resolvable:$true] %s15_s10 }
   0x4   :  { %s104_s11 = scalar_lea.vmem %s16_s10, 256  ;;  %p109_p1 = scmp.lt.s32.totalorder %s16_s10, %s16_s10 }
   0x5   :  { %p105_p0 = scmp.ne.s32.totalorder %s16_s10, %s104_s11  ;;  %p110_p2 = scmp.lt.s32.totalorder %s104_s11, %s104_s11 }
   0x7   :  { %p111_p3 = por %p110_p2, %p109_p1 }
   0x9   :  { %p112_p4 = pnand %p111_p3, %p105_p0 }
   0xb   :  { %115 = shalt.err (!%p112_p4)
}
   0xc   :  { %s163_s12 = smov 128   ;;  %s164_s13 = smov 8  }
   0xd   :  { %21 = dma.hbm_to_vmem [thread:$0]  %s191_s0, 256, %s16_s10, [#allocation3], %s163_s12, %s163_s12, %s164_s13  }
   0xe   :  { %s165_s16 = smov [#allocation5]  }
   0xf   :  { %s27_s17 = sshll.u32 %s165_s16, 4  ;;  %s28_s17 = int_to_ptr.vmem [resolvable:$true] %s27_s17 }
  0x10   :  { %s124_s18 = scalar_lea.vmem %s28_s17, 256  ;;  %p129_p6 = scmp.lt.s32.totalorder %s28_s17, %s28_s17 }
  0x11   :  { %p125_p5 = scmp.ne.s32.totalorder %s28_s17, %s124_s18  ;;  %p130_p7 = scmp.lt.s32.totalorder %s124_s18, %s124_s18 }
  0x13   :  { %p131_p8 = por %p130_p7, %p129_p6 }
  0x15   :  { %p132_p9 = pnand %p131_p8, %p125_p5 }
  0x17   :  { %135 = shalt.err (!%p132_p9)
}
  0x18   :  { %33 = dma.hbm_to_vmem [thread:$0]  %s192_s1, 256, %s28_s17, [#allocation6], %s163_s12, %s163_s12, %s164_s13  }
  0x19   :  { %156 = dma.done.wait [#allocation3], 256  }
  0x1a   :  { %157 = vsyncadd [#allocation3], 4294967040 }
  0x1b   :  { %158 = dma.done.wait [#allocation6], 256  }
  0x1c   :  { %159 = vsyncadd [#allocation6], 4294967040  ;;  %v40_v0 = vld [vmem:[#allocation2] sm:$0xff]  ;;  %v41_v1 = vld [vmem:[#allocation5] sm:$0xff]  ;;  %s166_s0 = smov [#allocation7]  }
  0x1d   :  { %v54_v2 = vld [vmem:[#allocation2 + $0x8] sm:$0xff]  ;;  %v42_v3 = vsub.f32 %v41_v1, %v40_v0  ;;  %v56_v4 = vld [vmem:[#allocation5 + $0x8] sm:$0xff]  ;;  %s75_s1 = sshll.u32 %s166_s0, 4  ;;  %s76_s1 = int_to_ptr.vmem [resolvable:$true] %s75_s1 }
  0x1e   :  { %v57_v5 = vsub.f32 %v56_v4, %v54_v2  ;;  %s136_s21 = scalar_lea.vmem %s76_s1, 128  ;;  %p141_p11 = scmp.lt.s32.totalorder %s76_s1, %s76_s1 }
  0x1f   :  { %v43_v6 = vand.u32 2147483647, %v42_v3  ;;  %p137_p10 = scmp.ne.s32.totalorder %s76_s1, %s136_s21  ;;  %p142_p12 = scmp.lt.s32.totalorder %s136_s21, %s136_s21 }
  0x20   :  { %v58_v7 = vand.u32 2147483647, %v57_v5 }
  0x21   :  { %v45_v8 = vmul.f32 0.5, %v43_v6  ;;  %v85_v15 = vadd.f32 7.917595, %v43_v6  ;;  %vm44_vm0 = vcmp.lt.f32.partialorder %v43_v6, 10.0  ;;  %p143_p13 = por %p142_p12, %p141_p11 }
  0x22   :  { %v60_v9 = vmul.f32 0.5, %v58_v7  ;;  %v86_v17 = vadd.f32 7.917595, %v58_v7  ;;  %vm59_vm1 = vcmp.lt.f32.partialorder %v58_v7, 10.0 }
  0x23   :  { %v46_v10 = vadd.f32 1.0, %v45_v8  ;;  %p144_p0 = pnand %p143_p13, %p137_p10 }
  0x24   :  { %v61_v11 = vadd.f32 1.0, %v60_v9 }
  0x25   :  { %92 = vlog2.f32 %v46_v10 }
  0x26   :  { %94 = vlog2.f32 %v61_v11 }
  0x32   :  { %v93_v12 = vpop.eup %92 }
  0x33   :  { %v95_v13 = vpop.eup %94  ;;  %v48_v14 = vmul.f32 0.6931472, %v93_v12 }
  0x34   :  { %v63_v16 = vmul.f32 0.6931472, %v95_v13 }
  0x35   :  { %v49_v18 = vmul.f32 10.0, %v48_v14 }
  0x36   :  { %v64_v19 = vmul.f32 10.0, %v63_v16 }
  0x37   :  { %v51_v20 = vsel %vm44_vm0, %v49_v18, %v85_v15 }
  0x38   :  { %v66_v21 = vsel %vm59_vm1, %v64_v19, %v86_v17 }
  0x39   :  { %v67_v22 = vadd.f32 %v66_v21, %v51_v20 }
  0x3b   :  { %68 = vst [vmem:[#allocation7] sm:$0xff] %v67_v22 }
  0x3c   :  { %147 = shalt.err (!%p144_p0)
}
  0x3d   :  { %78 = dma.vmem_to_hbm [thread:$0]  %s76_s1, 128, %s193_s2, [#allocation4]  }
  0x3e   :  { %160 = dma.done.wait [#allocation4], 128  }
  0x3f   :  { %161 = vsyncadd [#allocation4], 4294967168 }
  0x40   :  { %82 = vsyncpa [#allocation3], 1 }
  0x41   :  { %83 = vsyncpa [#allocation6], 1 }
  0x42   :  { %84 = vsyncpa [#allocation4], 1 }

</bundles_post_ra>
